<compile_context>
chip_gen: v5e
topology: v5e:2x2
jax: 0.10.0
libtpu: 0.0.40
codegen_flags: <defaults>
</compile_context>

<pallas_src>
import functools

import jax
import jax.numpy as jnp
from jax.experimental import pallas as pl
from jax.experimental.pallas import tpu as pltpu


def _ffn_kernel(x_ref, g_ref, b_ref, w1_ref, b1_ref, w2_ref, b2_ref, o_ref,
                *, eps):
    # ---- LayerNorm over last dim (f32 statistics) ----
    x = x_ref[...].astype(jnp.float32)                      # (TM, D)
    mean = jnp.mean(x, axis=-1, keepdims=True)
    centered = x - mean
    var = jnp.mean(centered * centered, axis=-1, keepdims=True)
    xn = centered * jax.lax.rsqrt(var + eps)
    xn = xn * g_ref[...] + b_ref[...]                       # gamma/beta: (1, D)

    # ---- Linear 1 (D -> H): bf16 operands into the MXU, f32 accumulate ----
    h = jnp.dot(xn.astype(jnp.bfloat16), w1_ref[...],
                preferred_element_type=jnp.float32)
    h = h + b1_ref[...]                                     # (TM, H), f32
    h = h * jax.nn.sigmoid(h)                               # SiLU (f32 VPU/EUP)

    # TODO(synk): training-mode dropout (p=0.10092) not implemented; forward is
    # eval-mode (dropout == identity).

    # ---- Linear 2 (H -> D): bf16 operands, f32 accumulate ----
    y = jnp.dot(h.astype(jnp.bfloat16), w2_ref[...],
                preferred_element_type=jnp.float32)
    y = y + b2_ref[...]                                     # (TM, D)

    o_ref[...] = y.astype(o_ref.dtype)


def _round_up(a, m):
    return ((a + m - 1) // m) * m


def feed_forward_module(x, params, *, eps=1e-5, row_tile=256):
    """x: (batch, seq, embed_dim) float32. Returns same shape/dtype."""
    gamma, beta, w1, b1, w2, b2 = (
        params["gamma"], params["beta"], params["w1"], params["b1"],
        params["w2"], params["b2"])
    B, S, D = x.shape
    H = w1.shape[1]
    M = B * S

    # Effective row tile: big enough to fill the MXU (256 rows), but no larger
    # than the (sublane-padded) token count; keep it a multiple of 8 (f32
    # sublanes). Pad tokens so the grid divides evenly, slice off afterwards.
    tm = _round_up(min(row_tile, _round_up(M, 8)), 8)
    Mp = _round_up(M, tm)

    x2d = x.reshape(M, D)
    if Mp != M:
        x2d = jnp.pad(x2d, ((0, Mp - M), (0, 0)))

    # bf16 weights: halves weight DMA bytes / VMEM residency and unlocks bf16
    # MXU throughput. Biases / LN affine stay f32.
    w1_b = w1.astype(jnp.bfloat16)
    w2_b = w2.astype(jnp.bfloat16)
    gamma2 = gamma.reshape(1, D).astype(jnp.float32)
    beta2 = beta.reshape(1, D).astype(jnp.float32)
    b1_2 = b1.reshape(1, H).astype(jnp.float32)
    b2_2 = b2.reshape(1, D).astype(jnp.float32)

    grid = (Mp // tm,)

    # Explicit VMEM budget: double-buffered x/out tiles, resident bf16 weights
    # (Mosaic allocates 2 buffers even for constant index_map blocks), small
    # vectors, f32 intermediate, plus headroom. Capped at v7x physical 64 MiB.
    tile_bytes = 2 * (tm * D * 4) * 2                 # x + out tiles, 2 buffers each
    weight_bytes = 2 * (D * H * 2 + H * D * 2)         # bf16 w1 + w2, 2 buffers
    vec_bytes = 2 * (3 * D + H) * 4                    # gamma/beta/b1/b2
    inter_bytes = 2 * tm * H * 4                       # (TM, H) f32 intermediate + slack
    vmem_bytes = tile_bytes + weight_bytes + vec_bytes + inter_bytes + (8 << 20)
    vmem_bytes = int(min(max(vmem_bytes, 32 << 20), 64 << 20))
    # TODO(synk): if bf16 weights ever exceed ~20-25 MiB (very large D/H on
    # v7x's 64 MiB VMEM), add an H-tiled "arbitrary" grid axis with a scratch
    # accumulator instead of keeping both weights fully resident.

    cost = pl.CostEstimate(
        flops=4 * Mp * D * H,                 # two matmuls: 2*M*D*H each
        transcendentals=Mp * H,               # sigmoid in SiLU
        bytes_accessed=(2 * Mp * D * 4        # x in + y out (f32)
                        + 2 * D * H * 2       # bf16 weights
                        + (3 * D + H) * 4),   # vectors
    )

    kernel = functools.partial(_ffn_kernel, eps=eps)

    out2d = pl.pallas_call(
        kernel,
        out_shape=jax.ShapeDtypeStruct((Mp, D), x.dtype),
        grid_spec=pltpu.PrefetchScalarGridSpec(
            num_scalar_prefetch=0,
            grid=grid,
            in_specs=[
                pl.BlockSpec((tm, D), lambda i: (i, 0)),   # x tile
                pl.BlockSpec((1, D), lambda i: (0, 0)),    # gamma
                pl.BlockSpec((1, D), lambda i: (0, 0)),    # beta
                pl.BlockSpec((D, H), lambda i: (0, 0)),    # w1 (bf16, resident)
                pl.BlockSpec((1, H), lambda i: (0, 0)),    # b1
                pl.BlockSpec((H, D), lambda i: (0, 0)),    # w2 (bf16, resident)
                pl.BlockSpec((1, D), lambda i: (0, 0)),    # b2
            ],
            out_specs=pl.BlockSpec((tm, D), lambda i: (i, 0)),
        ),
        compiler_params=pltpu.CompilerParams(
            dimension_semantics=("parallel",),       # token axis shards across TCs (v7x)
            vmem_limit_bytes=vmem_bytes),
        cost_estimate=cost,
    )(x2d, gamma2, beta2, w1_b, b1_2, w2_b, b2_2)

    if Mp != M:
        out2d = out2d[:M]
    return out2d.reshape(B, S, D)


def init_params(key, embed_dim, expansion_factor=2):
    """Deterministic synthetic params matching the nn.Module's shapes.

    PyTorch nn.Linear stores weight as (out, in); we store the transposed
    (in, out) layout so the kernel does x @ W directly (same math)."""
    hidden = embed_dim * expansion_factor
    k1, k2, k3, k4 = jax.random.split(key, 4)
    scale1 = 1.0 / jnp.sqrt(embed_dim)
    scale2 = 1.0 / jnp.sqrt(hidden)
    return {
        "gamma": jnp.ones((embed_dim,), jnp.float32),       # LayerNorm weight
        "beta": jnp.zeros((embed_dim,), jnp.float32),        # LayerNorm bias
        "w1": jax.random.uniform(k1, (embed_dim, hidden), jnp.float32,
                                 -scale1, scale1),
        "b1": jax.random.uniform(k2, (hidden,), jnp.float32, -scale1, scale1),
        "w2": jax.random.uniform(k3, (hidden, embed_dim), jnp.float32,
                                 -scale2, scale2),
        "b2": jax.random.uniform(k4, (embed_dim,), jnp.float32,
                                 -scale2, scale2),
    }


def _reference(x, params, eps=1e-5):
    """Pure-JAX f32 reference of the same forward (dropout = identity)."""
    g, b = params["gamma"], params["beta"]
    mean = jnp.mean(x, axis=-1, keepdims=True)
    var = jnp.mean((x - mean) ** 2, axis=-1, keepdims=True)
    xn = (x - mean) / jnp.sqrt(var + eps) * g + b
    h = xn @ params["w1"] + params["b1"]
    h = h * jax.nn.sigmoid(h)
    return h @ params["w2"] + params["b2"]


if __name__ == "__main__":
    # Small shapes consistent with the module. embed_dim kept a multiple of 128
    # so the output stays lane-dense (production config uses 768).
    batch, seq, embed_dim, expansion = 2, 8, 128, 2

    key = jax.random.PRNGKey(0)
    kx, kp = jax.random.split(key)
    x = jax.random.normal(kx, (batch, seq, embed_dim), jnp.float32)
    params = init_params(kp, embed_dim, expansion)

    out = feed_forward_module(x, params)
    out = jax.block_until_ready(out)

    ref = _reference(x, params)
    assert out.shape == x.shape
    # bf16 MXU operands (f32 accumulation) -> slightly looser tolerance vs the
    # all-f32 reference.
    assert jnp.allclose(out, ref, atol=2e-2, rtol=2e-2), "mismatch vs reference"

    print("KERNEL_OK")
</pallas_src>

<mosaic_0001>
module attributes {stable_mosaic.version = 11 : i64} {
  func.func @_ffn_kernel(%arg0: i32, %arg1: memref<16x128xf32, #tpu.memory_space<vmem>>, %arg2: memref<1x128xf32, #tpu.memory_space<vmem>>, %arg3: memref<1x128xf32, #tpu.memory_space<vmem>>, %arg4: memref<128x256xbf16, #tpu.memory_space<vmem>>, %arg5: memref<1x256xf32, #tpu.memory_space<vmem>>, %arg6: memref<256x128xbf16, #tpu.memory_space<vmem>>, %arg7: memref<1x128xf32, #tpu.memory_space<vmem>>, %arg8: memref<16x128xf32, #tpu.memory_space<vmem>>) attributes {dimension_semantics = [#tpu.dimension_semantics<parallel>], iteration_bounds = array<i64: 1>, scalar_prefetch = 0 : i64, scratch_operands = 0 : i64, tpu.core_type = #tpu.core_type<tc>, window_params = [{transform_indices = @transform_0, window_bounds = array<i64: 16, 128>}, {pipeline_mode = #tpu.pipeline_mode<synchronous>, transform_indices = @transform_1, window_bounds = array<i64: 1, 128>}, {pipeline_mode = #tpu.pipeline_mode<synchronous>, transform_indices = @transform_2, window_bounds = array<i64: 1, 128>}, {pipeline_mode = #tpu.pipeline_mode<synchronous>, transform_indices = @transform_3, window_bounds = array<i64: 128, 256>}, {pipeline_mode = #tpu.pipeline_mode<synchronous>, transform_indices = @transform_4, window_bounds = array<i64: 1, 256>}, {pipeline_mode = #tpu.pipeline_mode<synchronous>, transform_indices = @transform_5, window_bounds = array<i64: 256, 128>}, {pipeline_mode = #tpu.pipeline_mode<synchronous>, transform_indices = @transform_6, window_bounds = array<i64: 1, 128>}, {transform_indices = @transform_7, window_bounds = array<i64: 16, 128>}]} {
    %c0 = arith.constant 0 : index
    %c0_0 = arith.constant 0 : index
    %0 = vector.load %arg1[%c0, %c0_0] : memref<16x128xf32, #tpu.memory_space<vmem>>, vector<16x128xf32>
    %cst = arith.constant dense<0.000000e+00> : vector<16xf32>
    %1 = vector.multi_reduction <add>, %0, %cst [1] : vector<16x128xf32> to vector<16xf32>
    %2 = vector.shape_cast %1 : vector<16xf32> to vector<16x1xf32>
    %cst_1 = arith.constant 1.280000e+02 : f32
    %3 = vector.broadcast %cst_1 : f32 to vector<16x1xf32>
    %4 = arith.divf %2, %3 : vector<16x1xf32>
    %5 = vector.broadcast %4 : vector<16x1xf32> to vector<16x128xf32>
    %6 = arith.subf %0, %5 : vector<16x128xf32>
    %7 = arith.mulf %6, %6 : vector<16x128xf32>
    %cst_2 = arith.constant dense<0.000000e+00> : vector<16xf32>
    %8 = vector.multi_reduction <add>, %7, %cst_2 [1] : vector<16x128xf32> to vector<16xf32>
    %9 = vector.shape_cast %8 : vector<16xf32> to vector<16x1xf32>
    %cst_3 = arith.constant 1.280000e+02 : f32
    %10 = vector.broadcast %cst_3 : f32 to vector<16x1xf32>
    %11 = arith.divf %9, %10 : vector<16x1xf32>
    %cst_4 = arith.constant 9.99999974E-6 : f32
    %12 = vector.broadcast %cst_4 : f32 to vector<16x1xf32>
    %13 = arith.addf %11, %12 : vector<16x1xf32>
    %14 = math.rsqrt %13 : vector<16x1xf32>
    %15 = vector.broadcast %14 : vector<16x1xf32> to vector<16x128xf32>
    %16 = arith.mulf %6, %15 : vector<16x128xf32>
    %c0_5 = arith.constant 0 : index
    %c0_6 = arith.constant 0 : index
    %17 = vector.load %arg2[%c0_5, %c0_6] : memref<1x128xf32, #tpu.memory_space<vmem>>, vector<1x128xf32>
    %18 = vector.broadcast %17 : vector<1x128xf32> to vector<16x128xf32>
    %19 = arith.mulf %16, %18 : vector<16x128xf32>
    %c0_7 = arith.constant 0 : index
    %c0_8 = arith.constant 0 : index
    %20 = vector.load %arg3[%c0_7, %c0_8] : memref<1x128xf32, #tpu.memory_space<vmem>>, vector<1x128xf32>
    %21 = vector.broadcast %20 : vector<1x128xf32> to vector<16x128xf32>
    %22 = arith.addf %19, %21 : vector<16x128xf32>
    %23 = arith.truncf %22 : vector<16x128xf32> to vector<16x128xbf16>
    %c0_9 = arith.constant 0 : index
    %c0_10 = arith.constant 0 : index
    %24 = vector.load %arg4[%c0_9, %c0_10] : memref<128x256xbf16, #tpu.memory_space<vmem>>, vector<128x256xbf16>
    %cst_11 = arith.constant dense<0.000000e+00> : vector<16x256xf32>
    %25 = tpu.matmul %23, %24, %cst_11 {dimension_numbers = #tpu.dot_dimension_numbers<[1], [0], [0], [1], [0, 0, 1, 1], [], []>} : vector<16x128xbf16>, vector<128x256xbf16>, vector<16x256xf32> -> vector<16x256xf32>
    %c0_12 = arith.constant 0 : index
    %c0_13 = arith.constant 0 : index
    %26 = vector.load %arg5[%c0_12, %c0_13] : memref<1x256xf32, #tpu.memory_space<vmem>>, vector<1x256xf32>
    %27 = vector.broadcast %26 : vector<1x256xf32> to vector<16x256xf32>
    %28 = arith.addf %25, %27 : vector<16x256xf32>
    %29 = arith.negf %28 : vector<16x256xf32>
    %30 = math.exp %29 : vector<16x256xf32>
    %cst_14 = arith.constant 1.000000e+00 : f32
    %31 = vector.broadcast %cst_14 : f32 to vector<16x256xf32>
    %32 = arith.addf %31, %30 : vector<16x256xf32>
    %33 = arith.divf %31, %32 : vector<16x256xf32>
    %34 = arith.mulf %28, %33 : vector<16x256xf32>
    %35 = arith.truncf %34 : vector<16x256xf32> to vector<16x256xbf16>
    %c0_15 = arith.constant 0 : index
    %c0_16 = arith.constant 0 : index
    %36 = vector.load %arg6[%c0_15, %c0_16] : memref<256x128xbf16, #tpu.memory_space<vmem>>, vector<256x128xbf16>
    %cst_17 = arith.constant dense<0.000000e+00> : vector<16x128xf32>
    %37 = tpu.matmul %35, %36, %cst_17 {dimension_numbers = #tpu.dot_dimension_numbers<[1], [0], [0], [1], [0, 0, 1, 1], [], []>} : vector<16x256xbf16>, vector<256x128xbf16>, vector<16x128xf32> -> vector<16x128xf32>
    %c0_18 = arith.constant 0 : index
    %c0_19 = arith.constant 0 : index
    %38 = vector.load %arg7[%c0_18, %c0_19] : memref<1x128xf32, #tpu.memory_space<vmem>>, vector<1x128xf32>
    %39 = vector.broadcast %38 : vector<1x128xf32> to vector<16x128xf32>
    %40 = arith.addf %37, %39 : vector<16x128xf32>
    %c0_20 = arith.constant 0 : index
    %c0_21 = arith.constant 0 : index
    %41 = vector.load %arg8[%c0_20, %c0_21] : memref<16x128xf32, #tpu.memory_space<vmem>>, vector<16x128xf32>
    tpu.vector_store %arg8[%c0_20, %c0_21], %40 {strides = array<i32>} : memref<16x128xf32, #tpu.memory_space<vmem>>, vector<16x128xf32>,
    return
  }
  func.func @transform_0(%arg0: i32) -> (i32, i32) {
    %c0_i32 = arith.constant 0 : i32
    %c0_i32_0 = arith.constant 0 : i32
    return %arg0, %c0_i32 : i32, i32
  }
  func.func @transform_1(%arg0: i32) -> (i32, i32) {
    %c0_i32 = arith.constant 0 : i32
    %c0_i32_0 = arith.constant 0 : i32
    %c0_i32_1 = arith.constant 0 : i32
    return %c0_i32, %c0_i32_0 : i32, i32
  }
  func.func @transform_2(%arg0: i32) -> (i32, i32) {
    %c0_i32 = arith.constant 0 : i32
    %c0_i32_0 = arith.constant 0 : i32
    %c0_i32_1 = arith.constant 0 : i32
    return %c0_i32, %c0_i32_0 : i32, i32
  }
  func.func @transform_3(%arg0: i32) -> (i32, i32) {
    %c0_i32 = arith.constant 0 : i32
    %c0_i32_0 = arith.constant 0 : i32
    %c0_i32_1 = arith.constant 0 : i32
    return %c0_i32, %c0_i32_0 : i32, i32
  }
  func.func @transform_4(%arg0: i32) -> (i32, i32) {
    %c0_i32 = arith.constant 0 : i32
    %c0_i32_0 = arith.constant 0 : i32
    %c0_i32_1 = arith.constant 0 : i32
    return %c0_i32, %c0_i32_0 : i32, i32
  }
  func.func @transform_5(%arg0: i32) -> (i32, i32) {
    %c0_i32 = arith.constant 0 : i32
    %c0_i32_0 = arith.constant 0 : i32
    %c0_i32_1 = arith.constant 0 : i32
    return %c0_i32, %c0_i32_0 : i32, i32
  }
  func.func @transform_6(%arg0: i32) -> (i32, i32) {
    %c0_i32 = arith.constant 0 : i32
    %c0_i32_0 = arith.constant 0 : i32
    %c0_i32_1 = arith.constant 0 : i32
    return %c0_i32, %c0_i32_0 : i32, i32
  }
  func.func @transform_7(%arg0: i32) -> (i32, i32) {
    %c0_i32 = arith.constant 0 : i32
    %c0_i32_0 = arith.constant 0 : i32
    return %arg0, %c0_i32 : i32, i32
  }
}

</mosaic_0001>

<bundles_post_ra>
// kernel: tpu_custom_call.1
= control target key start
LH: loop header
LB: loop body
LE: loop exit
PB: predicated region body
PF: predicated region fallthrough
CT: control target
= control target key end

     0   :  { %12 = vsyncpa [#allocation3], 0  ;;  %s1000_s0 = inlined_call_operand.hbm [shape: f32[16,128], index: 0, kind: input, shape index: {}]   ;;  %s1001_s1 = inlined_call_operand.hbm [shape: f32[1,128], index: 1, kind: input, shape index: {}]   ;;  %s1002_s2 = inlined_call_operand.vmem [shape: f32[1,128], index: 2, kind: input, shape index: {}]   ;;  %s1003_s3 = inlined_call_operand.hbm [shape: bf16[128,256], index: 3, kind: input, shape index: {}]   ;;  %s1004_s4 = inlined_call_operand.vmem [shape: f32[1,256], index: 4, kind: input, shape index: {}]   ;;  %s1005_s5 = inlined_call_operand.hbm [shape: bf16[256,128], index: 5, kind: input, shape index: {}]   ;;  %s1006_s6 = inlined_call_operand.vmem [shape: f32[1,128], index: 6, kind: input, shape index: {}]   ;;  %s1007_s7 = inlined_call_operand.hbm [shape: f32[16,128], index: 7, kind: output, shape index: {}]  }
   0x1   :  { %13 = vsyncpa [#allocation6], 0 }
   0x2   :  { %14 = vsyncpa [#allocation9], 0  ;;  %s34_s26 = sshll.u32 %s1001_s1, 4  ;;  %s35_s26 = int_to_ptr.hbm [resolvable:$true] %s34_s26 }
   0x3   :  { %15 = vsyncpa [#allocation4], 0  ;;  %s872_s27 = smov [#allocation5]   ;;  %s20_s8 = sshll.u32 %s1000_s0, 4  ;;  %s21_s8 = int_to_ptr.hbm [resolvable:$true] %s20_s8 }
   0x4   :  { %s36_s28 = sshll.u32 %s872_s27, 4  ;;  %s873_s9 = smov [#allocation2]   ;;  %s37_s28 = int_to_ptr.vmem [resolvable:$true] %s36_s28 }
   0x5   :  { %39 = dma.hbm_to_vmem [thread:$0]  %s35_s26, 16, %s37_s28, [#allocation6]  }
   0x6   :  { %s22_s10 = sshll.u32 %s873_s9, 4  ;;  %s874_s11 = smov 128   ;;  %s23_s10 = int_to_ptr.vmem [resolvable:$true] %s22_s10 }
   0x7   :  { %s875_s12 = smov 8   ;;  %s46_s14 = sshll.u32 %s1003_s3, 4  ;;  %s47_s14 = int_to_ptr.hbm [resolvable:$true] %s46_s14 }
   0x8   :  { %28 = dma.hbm_to_vmem [thread:$0]  %s21_s8, 256, %s23_s10, [#allocation3], %s874_s11, %s874_s11, %s875_s12  }
   0x9   :  { %s876_s15 = smov [#allocation7]   ;;  %s61_s18 = sshll.u32 %s1005_s5, 4  ;;  %s62_s18 = int_to_ptr.hbm [resolvable:$true] %s61_s18 }
   0xa   :  { %s48_s16 = sshll.u32 %s876_s15, 4  ;;  %s877_s19 = smov [#allocation8]   ;;  %s49_s16 = int_to_ptr.vmem [resolvable:$true] %s48_s16 }
   0xb   :  { %54 = dma.hbm_to_vmem [thread:$0]  %s47_s14, 2048, %s49_s16, [#allocation6], %s874_s11, %s874_s11, %s875_s12  }
   0xc   :  { %s63_s20 = sshll.u32 %s877_s19, 4  ;;  %s878_s21 = smov 64   ;;  %s64_s20 = int_to_ptr.vmem [resolvable:$true] %s63_s20 }
   0xd   :  { %s879_s22 = smov 4  }
   0xe   :  { %69 = dma.hbm_to_vmem [thread:$0]  %s62_s18, 2048, %s64_s20, [#allocation9], %s878_s21, %s878_s21, %s879_s22  }
   0xf   :  { %864 = dma.done.wait [#allocation3], 256  }
  0x10   :  { %865 = vsyncadd [#allocation3], 4294967040 }
  0x11   :  { %866 = dma.done.wait [#allocation6], 2064  }
  0x12   :  { %867 = vsyncadd [#allocation6], 4294965232 }
  0x13   :  { %868 = dma.done.wait [#allocation9], 2048  }
  0x14   :  { %869 = vsyncadd [#allocation9], 4294965248  ;;  %v88_v0 = vld [vmem:[#allocation2] sm:$0xff]  ;;  %v89_v1 = vld [vmem:[#allocation2 + $0x8] sm:$0xff]  ;;  %v880_v2 = vmov 128.0   ;;  %s881_s25 = smov [#allocation10]  }
  0x15   :  { %90 = vadd.xlane.f32.xlu0 %v88_v0  ;;  %722 = vrcp.f32 %v880_v2  ;;  %v603_v17 = vld [vmem:[#allocation7 + $0x70] sm:$0xf]  ;;  %v692_v18 = vld [vmem:[#allocation7 + $0x74] sm:$0xf0]  ;;  %v691_v19 = vld [vmem:[#allocation7 + $0x74] sm:$0xf] }
  0x16   :  { %v604_v20 = vor.u32 %v692_v18, %v603_v17  ;;  %v605_v21 = vld [vmem:[#allocation7 + $0x78] sm:$0xf0]  ;;  %v595_v23 = vld [vmem:[#allocation7 + $0x60] sm:$0xf]  ;;  %v690_v24 = vld [vmem:[#allocation7 + $0x64] sm:$0xf0] }
  0x17   :  { %v608_v22 = vor.u32 %v691_v19, %v605_v21  ;;  %v689_v25 = vld [vmem:[#allocation7 + $0x64] sm:$0xf]  ;;  %v596_v26 = vor.u32 %v690_v24, %v595_v23  ;;  %v597_v27 = vld [vmem:[#allocation7 + $0x68] sm:$0xf0]  ;;  %v587_v29 = vld [vmem:[#allocation7 + $0x50] sm:$0xf] }
  0x18   :  { %252 = vmatpush.bf16.msra.mxu0 %v604_v20  ;;  %v600_v28 = vor.u32 %v689_v25, %v597_v27  ;;  %v688_v30 = vld [vmem:[#allocation7 + $0x54] sm:$0xf0]  ;;  %v687_v31 = vld [vmem:[#allocation7 + $0x54] sm:$0xf]  ;;  %v589_v33 = vld [vmem:[#allocation7 + $0x58] sm:$0xf0] }
  0x19   :  { %266 = vmatpush.bf16.msra.mxu1 %v608_v22  ;;  %v588_v32 = vor.u32 %v688_v30, %v587_v29  ;;  %v592_v34 = vor.u32 %v687_v31, %v589_v33  ;;  %v579_v35 = vld [vmem:[#allocation7 + $0x40] sm:$0xf]  ;;  %v686_v36 = vld [vmem:[#allocation7 + $0x44] sm:$0xf0]  ;;  %v685_v37 = vld [vmem:[#allocation7 + $0x44] sm:$0xf] }
  0x1a   :  { %v580_v38 = vor.u32 %v686_v36, %v579_v35  ;;  %v581_v39 = vld [vmem:[#allocation7 + $0x48] sm:$0xf0]  ;;  %v571_v41 = vld [vmem:[#allocation7 + $0x30] sm:$0xf]  ;;  %v684_v42 = vld [vmem:[#allocation7 + $0x34] sm:$0xf0] }
  0x1b   :  { %v723_v3 = vpop.eup %722  ;;  %v584_v40 = vor.u32 %v685_v37, %v581_v39  ;;  %v683_v43 = vld [vmem:[#allocation7 + $0x34] sm:$0xf]  ;;  %v572_v44 = vor.u32 %v684_v42, %v571_v41  ;;  %v573_v45 = vld [vmem:[#allocation7 + $0x38] sm:$0xf0]  ;;  %v563_v47 = vld [vmem:[#allocation7 + $0x20] sm:$0xf] }
  0x1c   :  { %v95_v4 = vmul.f32 128.0, %v723_v3  ;;  %vm99_vm0 = vweird.f32 %v723_v3  ;;  %253 = vmatpush.bf16.msra.mxu0 %v596_v26  ;;  %v576_v46 = vor.u32 %v683_v43, %v573_v45  ;;  %v682_v48 = vld [vmem:[#allocation7 + $0x24] sm:$0xf0]  ;;  %v681_v49 = vld [vmem:[#allocation7 + $0x24] sm:$0xf]  ;;  %v699_v33 = vld [vmem:[#allocation8 + $0x30] sm:$0xff] }
  0x1d   :  { %92 = vadd.xlane.f32.xlu0 %v89_v1  ;;  %267 = vmatpush.bf16.msra.mxu1 %v600_v28  ;;  %v564_v50 = vor.u32 %v682_v48, %v563_v47  ;;  %v565_v51 = vld [vmem:[#allocation7 + $0x28] sm:$0xf0]  ;;  %v555_v53 = vld [vmem:[#allocation7 + $0x10] sm:$0xf]  ;;  %v680_v54 = vld [vmem:[#allocation7 + $0x14] sm:$0xf0] }
  0x1e   :  { %v96_v5 = vsub.f32 1.0, %v95_v4  ;;  %v568_v52 = vor.u32 %v681_v49, %v565_v51  ;;  %v679_v55 = vld [vmem:[#allocation7 + $0x14] sm:$0xf]  ;;  %v556_v56 = vor.u32 %v680_v54, %v555_v53  ;;  %v557_v57 = vld [vmem:[#allocation7 + $0x18] sm:$0xf0]  ;;  %v706_v35 = vld [vmem:[#allocation8 + $0x68] sm:$0xff] }
  0x1f   :  { %v547_v58 = vld [vmem:[#allocation7] sm:$0xf]  ;;  %v678_v59 = vld [vmem:[#allocation7 + $0x4] sm:$0xf0]  ;;  %v560_v60 = vor.u32 %v679_v55, %v557_v57  ;;  %v677_v61 = vld [vmem:[#allocation7 + $0x4] sm:$0xf] }
  0x20   :  { %v97_v6 = vmul.f32 %v723_v3, %v96_v5  ;;  %254 = vmatpush.bf16.msra.mxu0 %v588_v32  ;;  %v549_v62 = vld [vmem:[#allocation7 + $0x8] sm:$0xf0]  ;;  %v719_v22 = vld [vmem:[#allocation5] ss:$0 sm:$0xff]  ;;  %v697_v37 = vld [vmem:[#allocation8 + $0x20] sm:$0xff]  ;;  %s528_s26 = sshll.u32 %s881_s25, 4  ;;  %s529_s26 = int_to_ptr.vmem [resolvable:$true] %s528_s26 }
  0x21   :  { %268 = vmatpush.bf16.msra.mxu1 %v592_v34  ;;  %v552_v2 = vor.u32 %v677_v61, %v549_v62  ;;  %v720_v27 = vld [vmem:[%s1002_s2] ss:$0 sm:$0xff]  ;;  %v700_v32 = vld [vmem:[#allocation8 + $0x38] sm:$0xff]  ;;  %v707_v34 = vld [vmem:[#allocation8 + $0x70] sm:$0xff]  ;;  %s530_s29 = sshll.u32 %s1007_s7, 4  ;;  %s531_s29 = int_to_ptr.hbm [resolvable:$true] %s530_s29 }
  0x22   :  { %v98_v7 = vadd.f32 %v723_v3, %v97_v6  ;;  %494 = vmatpush.bf16.msra.mxu2 %v700_v32  ;;  %v166_v36 = vld [vmem:[%s1004_s4] sm:$0x3]  ;;  %v696_v41 = vld [vmem:[#allocation8 + $0x18] sm:$0xff]  ;;  %v695_v47 = vld [vmem:[#allocation8 + $0x10] sm:$0xff] }
  0x23   :  { %v168_v39 = vperm.slane %v166_v36, 0  ;;  %v704_v42 = vld [vmem:[#allocation8 + $0x58] sm:$0xff]  ;;  %v703_v48 = vld [vmem:[#allocation8 + $0x50] sm:$0xff]  ;;  %v694_v51 = vld [vmem:[#allocation8 + $0x8] sm:$0xff] }
  0x24   :  { %v940_v8 = vsel %vm99_vm0, %v723_v3, %v98_v7  ;;  %255 = vmatpush.bf16.msra.mxu0 %v580_v38  ;;  %v705_v38 = vld [vmem:[#allocation8 + $0x60] sm:$0xff] }
  0x25   :  { %269 = vmatpush.bf16.msra.mxu1 %v584_v40  ;;  %v169_v40 = vperm.slane %v166_v36, 1  ;;  %v693_v57 = vld [vmem:[#allocation8] sm:$0xff] }
  0x26   :  { %495 = vmatpush.bf16.msra.mxu2 %v699_v33 }
  0x28   :  { %256 = vmatpush.bf16.msra.mxu0 %v572_v44 }
  0x29   :  { %270 = vmatpush.bf16.msra.mxu1 %v576_v46 }
  0x2c   :  { %257 = vmatpush.bf16.msra.mxu0 %v564_v50 }
  0x2d   :  { %271 = vmatpush.bf16.msra.mxu1 %v568_v52  ;;  %v702_v52 = vld [vmem:[#allocation8 + $0x48] sm:$0xff] }
  0x30   :  { %258 = vmatpush.bf16.msra.mxu0 %v556_v56 }
  0x31   :  { %272 = vmatpush.bf16.msra.mxu1 %v560_v60 }
  0x35   :  { %273 = vmatpush.bf16.msra.mxu1 %v552_v2 }
  0x88   :  { %v91_v9 = vpop.xlane.xlu0 %90 }
  0x89   :  { %v101_v10 = vmul.f32 %v940_v8, %v91_v9 }
  0x8b   :  { %v943_v11 = vsub.f32 %v88_v0, %v101_v10  ;;  %v548_v0 = vor.u32 %v678_v59, %v547_v58  ;;  %v701_v58 = vld [vmem:[#allocation8 + $0x40] sm:$0xff] }
  0x8d   :  { %v105_v12 = vmul.f32 %v943_v11, %v943_v11  ;;  %259 = vmatpush.bf16.msra.mxu0 %v548_v0 }
  0x8f   :  { %107 = vadd.xlane.f32.xlu1 %v105_v12 }
  0x90   :  { %v93_v13 = vpop.xlane.xlu0 %92 }
  0x91   :  { %v102_v14 = vmul.f32 %v940_v8, %v93_v13 }
  0x93   :  { %v948_v15 = vsub.f32 %v89_v1, %v102_v14 }
  0x95   :  { %v106_v16 = vmul.f32 %v948_v15, %v948_v15 }
  0x97   :  { %109 = vadd.xlane.f32.xlu1 %v106_v16 }
 0x102   :  { %v108_v63 = vpop.xlane.xlu1 %107 }
 0x103   :  { %v111_v1 = vmul.f32 %v108_v63, %v940_v8 }
 0x105   :  { %v113_v3 = vadd.f32 1e-05, %v111_v1 }
 0x107   :  { %724 = vrsqrt.f32 %v113_v3  ;;  %vm121_vm2 = vweird.f32 %v113_v3 }
 0x10a   :  { %v110_v4 = vpop.xlane.xlu1 %109 }
 0x10b   :  { %v112_v5 = vmul.f32 %v110_v4, %v940_v8 }
 0x10d   :  { %v725_v6 = vpop.eup %724  ;;  %v114_v7 = vadd.f32 1e-05, %v112_v5 }
 0x10e   :  { %v116_v9 = vmul.f32 %v725_v6, %v113_v3  ;;  %vm122_vm1 = vweird.f32 %v725_v6 }
 0x10f   :  { %726 = vrsqrt.f32 %v114_v7  ;;  %vm123_vm3 = vmor %vm121_vm2, %vm122_vm1  ;;  %vm131_vm5 = vweird.f32 %v114_v7 }
 0x110   :  { %v117_v10 = vmul.f32 %v725_v6, %v116_v9 }
 0x112   :  { %v118_v12 = vmul.f32 0.5, %v117_v10 }
 0x114   :  { %v119_v13 = vsub.f32 1.5, %v118_v12 }
 0x115   :  { %v727_v14 = vpop.eup %726 }
 0x116   :  { %v120_v16 = vmul.f32 %v725_v6, %v119_v13  ;;  %v126_v17 = vmul.f32 %v727_v14, %v114_v7  ;;  %vm132_vm4 = vweird.f32 %v727_v14 }
 0x117   :  { %vm133_vm6 = vmor %vm131_vm5, %vm132_vm4 }
 0x118   :  { %v127_v18 = vmul.f32 %v727_v14, %v126_v17  ;;  %v124_v20 = vsel %vm123_vm3, %v725_v6, %v120_v16 }
 0x119   :  { %v135_v8 = vmul.f32 %v124_v20, %v943_v11  ;;  %v708_v11 = vld [vmem:[#allocation8 + $0x78] sm:$0xff] }
 0x11a   :  { %v128_v19 = vmul.f32 0.5, %v127_v18  ;;  %508 = vmatpush.bf16.msra.mxu3 %v708_v11 }
 0x11b   :  { %v141_v26 = vmul.f32 %v719_v22, %v135_v8 }
 0x11c   :  { %v129_v21 = vsub.f32 1.5, %v128_v19 }
 0x11d   :  { %v147_v29 = vadd.f32 %v720_v27, %v141_v26 }
 0x11e   :  { %v130_v23 = vmul.f32 %v727_v14, %v129_v21  ;;  %509 = vmatpush.bf16.msra.mxu3 %v707_v34 }
 0x120   :  { %v134_v24 = vsel %vm133_vm6, %v727_v14, %v130_v23 }
 0x121   :  { %v136_v25 = vmul.f32 %v134_v24, %v948_v15  ;;  %v698_v15 = vld [vmem:[#allocation8 + $0x28] sm:$0xff] }
 0x122   :  { %496 = vmatpush.bf16.msra.mxu2 %v698_v15  ;;  %510 = vmatpush.bf16.msra.mxu3 %v706_v35 }
 0x123   :  { %v142_v28 = vmul.f32 %v719_v22, %v136_v25 }
 0x125   :  { %v148_v30 = vadd.f32 %v720_v27, %v142_v28 }
 0x126   :  { %497 = vmatpush.bf16.msra.mxu2 %v697_v37  ;;  %511 = vmatpush.bf16.msra.mxu3 %v705_v38 }
 0x127   :  { %v149_v31 = vpack.c.bf16 %v148_v30, %v147_v29 }
 0x129   :  { %260 = vmatmul.bf16.vlgmr.msra.gmra.mxu0 %v149_v31  ;;  %274 = vmatmul.bf16.vlgmr.msra.gmra.mxu1 %v149_v31 }
 0x12a   :  { %498 = vmatpush.bf16.msra.mxu2 %v696_v41  ;;  %512 = vmatpush.bf16.msra.mxu3 %v704_v42 }
 0x12e   :  { %499 = vmatpush.bf16.msra.mxu2 %v695_v47  ;;  %513 = vmatpush.bf16.msra.mxu3 %v703_v48 }
 0x132   :  { %500 = vmatpush.bf16.msra.mxu2 %v694_v51  ;;  %514 = vmatpush.bf16.msra.mxu3 %v702_v52 }
 0x136   :  { %501 = vmatpush.bf16.msra.mxu2 %v693_v57  ;;  %515 = vmatpush.bf16.msra.mxu3 %v701_v58 }
 0x1a6   :  { %v261_v43 = vpop.f32.mrf.mxu0  ;;  %v275_v44 = vpop.f32.mrf.mxu1 }
 0x1a7   :  { %v962_v45 = vadd.f32 %v261_v43, %v168_v39  ;;  %v964_v46 = vadd.f32 %v275_v44, %v169_v40 }
 0x1a9   :  { %v609_v49 = vmul.f32 -1.442695, %v962_v45  ;;  %v610_v50 = vmul.f32 -1.442695, %v964_v46 }
 0x1ab   :  { %728 = vpow2.f32 %v609_v49 }
 0x1ac   :  { %730 = vpow2.f32 %v610_v50 }
 0x1ae   :  { %v263_v53 = vpop.f32.mrf.mxu0  ;;  %v277_v54 = vpop.f32.mrf.mxu1 }
 0x1af   :  { %v968_v55 = vadd.f32 %v263_v53, %v168_v39  ;;  %v970_v56 = vadd.f32 %v277_v54, %v169_v40 }
 0x1b1   :  { %v729_v59 = vpop.eup %728  ;;  %v611_v60 = vmul.f32 -1.442695, %v968_v55  ;;  %v612_v63 = vmul.f32 -1.442695, %v970_v56 }
 0x1b2   :  { %v731_v61 = vpop.eup %730  ;;  %v292_v62 = vadd.f32 1.0, %v729_v59 }
 0x1b3   :  { %v293_v0 = vadd.f32 1.0, %v731_v61  ;;  %732 = vpow2.f32 %v611_v60 }
 0x1b4   :  { %734 = vrcp.f32 %v292_v62  ;;  %vm301_vm8 = vweird.f32 %v292_v62  ;;  %v305_v19 = vand.u32 2147483647, %v292_v62  ;;  %v307_v20 = vand.u32 2147483648, %v292_v62 }
 0x1b5   :  { %736 = vrcp.f32 %v293_v0  ;;  %vm316_vm9 = vweird.f32 %v293_v0  ;;  %v320_v8 = vand.u32 2147483647, %v293_v0  ;;  %v322_v26 = vand.u32 2147483648, %v293_v0 }
 0x1b6   :  { %738 = vpow2.f32 %v612_v63  ;;  %vm306_vm13 = vcmp.eq.f32.partialorder %v305_v19, 8.507059e+37  ;;  %v308_v31 = vor.u32 1.1754944e-38, %v307_v20 }
 0x1b7   :  { %v323_v39 = vor.u32 1.1754944e-38, %v322_v26  ;;  %vm321_vm3 = vcmp.eq.f32.partialorder %v320_v8, 8.507059e+37 }
 0x1b9   :  { %v733_v1 = vpop.eup %732 }
 0x1ba   :  { %v735_v2 = vpop.eup %734  ;;  %v294_v3 = vadd.f32 1.0, %v733_v1 }
 0x1bb   :  { %v737_v4 = vpop.eup %736  ;;  %v297_v5 = vmul.f32 %v735_v2, %v292_v62  ;;  %vm302_vm7 = vweird.f32 %v735_v2 }
 0x1bc   :  { %v739_v6 = vpop.eup %738  ;;  %v312_v7 = vmul.f32 %v737_v4, %v293_v0  ;;  %740 = vrcp.f32 %v294_v3  ;;  %v337_v23 = vand.u32 2147483648, %v294_v3  ;;  %vm974_vm10 = vmor %vm301_vm8, %vm302_vm7  ;;  %vm317_vm11 = vweird.f32 %v737_v4 }
 0x1bd   :  { %v298_v9 = vsub.f32 1.0, %v297_v5  ;;  %v295_v10 = vadd.f32 1.0, %v739_v6  ;;  %v335_v30 = vand.u32 2147483647, %v294_v3  ;;  %vm331_vm14 = vweird.f32 %v294_v3  ;;  %vm981_vm15 = vmor %vm316_vm9, %vm317_vm11 }
 0x1be   :  { %v313_v12 = vsub.f32 1.0, %v312_v7  ;;  %v338_v34 = vor.u32 1.1754944e-38, %v337_v23 }
 0x1bf   :  { %v299_v13 = vmul.f32 %v735_v2, %v298_v9  ;;  %742 = vrcp.f32 %v295_v10  ;;  %v350_v15 = vand.u32 2147483647, %v295_v10  ;;  %v352_v35 = vand.u32 2147483648, %v295_v10 }
 0x1c0   :  { %v314_v16 = vmul.f32 %v737_v4, %v313_v12  ;;  %vm336_vm2 = vcmp.eq.f32.partialorder %v335_v30, 8.507059e+37  ;;  %vm346_vm4 = vweird.f32 %v295_v10 }
 0x1c1   :  { %v300_v17 = vadd.f32 %v735_v2, %v299_v13  ;;  %v353_v48 = vor.u32 1.1754944e-38, %v352_v35  ;;  %vm351_vm6 = vcmp.eq.f32.partialorder %v350_v15, 8.507059e+37 }
 0x1c2   :  { %v741_v14 = vpop.eup %740  ;;  %v315_v25 = vadd.f32 %v737_v4, %v314_v16 }
 0x1c3   :  { %v327_v18 = vmul.f32 %v741_v14, %v294_v3  ;;  %v304_v28 = vsel %vm974_vm10, %v735_v2, %v300_v17  ;;  %vm332_vm12 = vweird.f32 %v741_v14 }
 0x1c4   :  { %v309_v36 = vsel %vm306_vm13, %v308_v31, %v304_v28  ;;  %v319_v37 = vsel %vm981_vm15, %v737_v4, %v315_v25  ;;  %vm333_vm0 = vmor %vm331_vm14, %vm332_vm12 }
 0x1c5   :  { %v743_v21 = vpop.eup %742  ;;  %v328_v22 = vsub.f32 1.0, %v327_v18  ;;  %v356_v43 = vmul.f32 %v309_v36, %v962_v45  ;;  %v324_v44 = vsel %vm321_vm3, %v323_v39, %v319_v37  ;;  %v721_v45 = vld [vmem:[%s1006_s6] ss:$0 sm:$0xff] }
 0x1c6   :  { %v342_v27 = vmul.f32 %v743_v21, %v295_v10  ;;  %vm347_vm1 = vweird.f32 %v743_v21  ;;  %v357_v52 = vmul.f32 %v324_v44, %v964_v46 }
 0x1c7   :  { %v329_v29 = vmul.f32 %v741_v14, %v328_v22  ;;  %vm348_vm5 = vmor %vm346_vm4, %vm347_vm1 }
 0x1c8   :  { %v343_v32 = vsub.f32 1.0, %v342_v27 }
 0x1c9   :  { %v330_v33 = vadd.f32 %v741_v14, %v329_v29 }
 0x1ca   :  { %v344_v38 = vmul.f32 %v743_v21, %v343_v32 }
 0x1cb   :  { %v334_v40 = vsel %vm333_vm0, %v741_v14, %v330_v33 }
 0x1cc   :  { %v339_v41 = vsel %vm336_vm2, %v338_v34, %v334_v40  ;;  %v345_v42 = vadd.f32 %v743_v21, %v344_v38 }
 0x1cd   :  { %v358_v47 = vmul.f32 %v339_v41, %v968_v55 }
 0x1ce   :  { %v349_v49 = vsel %vm348_vm5, %v743_v21, %v345_v42 }
 0x1cf   :  { %v354_v50 = vsel %vm351_vm6, %v353_v48, %v349_v49  ;;  %v360_v51 = vpack.c.bf16 %v358_v47, %v356_v43 }
 0x1d0   :  { %v359_v53 = vmul.f32 %v354_v50, %v970_v56 }
 0x1d1   :  { %502 = vmatmul.bf16.vlgmr.msra.gmra.mxu2 %v360_v51 }
 0x1d2   :  { %v361_v54 = vpack.c.bf16 %v359_v53, %v357_v52 }
 0x1d4   :  { %516 = vmatmul.bf16.vlgmr.msra.gmra.mxu3 %v361_v54 }
 0x254   :  { %v503_v57 = vpop.f32.mrf.mxu2 }
 0x255   :  { %v504_v58 = vadd.f32 %v721_v45, %v503_v57 }
 0x257   :  { %v517_v55 = vpop.f32.mrf.mxu3 }
 0x258   :  { %v518_v59 = vadd.f32 %v517_v55, %v504_v58 }
 0x25a   :  { %522 = vst [vmem:[#allocation10] sm:$0xff] %v518_v59 }
 0x25c   :  { %v505_v60 = vpop.f32.mrf.mxu2 }
 0x25d   :  { %v506_v61 = vadd.f32 %v721_v45, %v505_v60 }
 0x25f   :  { %v519_v46 = vpop.f32.mrf.mxu3 }
 0x260   :  { %v520_v56 = vadd.f32 %v519_v46, %v506_v61 }
 0x262   :  { %523 = vst [vmem:[#allocation10 + $0x8] sm:$0xff] %v520_v56 }
 0x263   :  { %536 = dma.vmem_to_hbm [thread:$0]  %s529_s26, 256, %s531_s29, [#allocation4], %s874_s11, %s874_s11, %s875_s12  }
 0x264   :  { %870 = dma.done.wait [#allocation4], 256  }
 0x265   :  { %871 = vsyncadd [#allocation4], 4294967040 }
 0x266   :  { %541 = vsyncpa [#allocation3], 1 }
 0x267   :  { %542 = vsyncpa [#allocation6], 1 }
 0x268   :  { %543 = vsyncpa [#allocation9], 1 }
 0x269   :  { %544 = vsyncpa [#allocation4], 1 }

</bundles_post_ra>
